<compile_context>
chip_gen: v6e
topology: v6e:2x2x1
jax: 0.10.0
libtpu: 0.0.40
codegen_flags: <defaults>
</compile_context>

<pallas_src>
import math
import functools

import jax
import jax.numpy as jnp
from jax.experimental import pallas as pl
from jax.experimental.pallas import tpu as pltpu


def _pick_tile(dim, preferred):
    for t in preferred:
        if t <= dim and dim % t == 0:
            return t
    return dim


# ---------------------------------------------------------------------------
# Batched bias-free linear: (G, M, K) @ (G, K, N) -> (G, M, N) on the MXU.
# Used with G=3 for the fused Q/K/V projections and G=1 for the output proj.
# ---------------------------------------------------------------------------
def _bmm_kernel(x_ref, w_ref, o_ref, acc_ref):
    @pl.when(pl.program_id(3) == 0)
    def _():
        acc_ref[...] = jnp.zeros(acc_ref.shape, acc_ref.dtype)

    acc_ref[...] += jnp.dot(x_ref[0], w_ref[0],
                            preferred_element_type=jnp.float32)

    @pl.when(pl.program_id(3) == pl.num_programs(3) - 1)
    def _():
        o_ref[0] = acc_ref[...].astype(o_ref.dtype)


def batched_linear_nobias(x, w):
    """x: (G, M, K) f32, w: (G, K, N) f32  ->  (G, M, N) f32."""
    G, M, K = x.shape
    G2, K2, N = w.shape
    assert G == G2 and K == K2
    tm = _pick_tile(M, (256, 128, 64, 32, 16, 8))
    tn = _pick_tile(N, (256, 128))
    tk = _pick_tile(K, (512, 256, 128))
    grid = (G, M // tm, N // tn, K // tk)
    cost = pl.CostEstimate(flops=2 * G * M * N * K,
                           transcendentals=0,
                           bytes_accessed=4 * G * (M * K + K * N + M * N))
    return pl.pallas_call(
        _bmm_kernel,
        out_shape=jax.ShapeDtypeStruct((G, M, N), x.dtype),
        grid_spec=pltpu.PrefetchScalarGridSpec(
            num_scalar_prefetch=0,
            grid=grid,
            in_specs=[pl.BlockSpec((1, tm, tk), lambda g, i, j, k: (g, i, k)),
                      pl.BlockSpec((1, tk, tn), lambda g, i, j, k: (g, k, j))],
            out_specs=pl.BlockSpec((1, tm, tn), lambda g, i, j, k: (g, i, j)),
            scratch_shapes=[pltpu.VMEM((tm, tn), jnp.float32)]),
        compiler_params=pltpu.CompilerParams(
            dimension_semantics=("parallel", "parallel", "parallel",
                                 "arbitrary")),
        cost_estimate=cost,
    )(x, w)


# ---------------------------------------------------------------------------
# Flash-style masked attention.
#   qkv  : (3, B, S, D) stacked projected activations (Q=qkv[0], K=qkv[1],
#          V=qkv[2]); heads are contiguous d_k-wide column blocks of D.
#   mask : (B, S, S) int32, 0 => masked out (score -> -1e9), broadcast over H.
#   out  : (B, S, D) context, already head-merged (no transpose needed).
# Grid = (B, H, q_tiles, kv_tiles); kv is the trailing "arbitrary" reduction.
# ---------------------------------------------------------------------------
def _flash_kernel(q_ref, k_ref, v_ref, mask_ref, o_ref,
                  m_sc, l_sc, acc_sc, *, scale, neg_inf):
    ki = pl.program_id(3)

    @pl.when(ki == 0)
    def _():
        m_sc[...] = jnp.full(m_sc.shape, -jnp.inf, m_sc.dtype)
        l_sc[...] = jnp.zeros(l_sc.shape, l_sc.dtype)
        acc_sc[...] = jnp.zeros(acc_sc.shape, acc_sc.dtype)

    q = q_ref[0, 0]                                   # (TQ, DK)
    k = k_ref[0, 0]                                   # (TK, DK)
    v = v_ref[0, 0]                                   # (TK, DK)

    s = jnp.dot(q, k.T, preferred_element_type=jnp.float32) * scale  # (TQ, TK)
    s = jnp.where(mask_ref[0] != 0, s, neg_inf)

    m_prev = m_sc[...]                                # (TQ, 1)
    m_new = jnp.maximum(m_prev, s.max(axis=-1, keepdims=True))
    alpha = jnp.exp(m_prev - m_new)
    p = jnp.exp(s - m_new)                            # (TQ, TK)

    l_sc[...] = alpha * l_sc[...] + p.sum(axis=-1, keepdims=True)
    acc_sc[...] = alpha * acc_sc[...] + jnp.dot(
        p.astype(v.dtype), v, preferred_element_type=jnp.float32)
    m_sc[...] = m_new

    @pl.when(ki == pl.num_programs(3) - 1)
    def _():
        inv_l = pl.reciprocal(l_sc[...], approx=True)
        o_ref[0] = (acc_sc[...] * inv_l).astype(o_ref.dtype)


def flash_attention(qkv, mask, h, *, tq=128, tkv=128):
    _, B, S, D = qkv.shape
    assert D % h == 0
    dk = D // h
    # Heads are sliced straight out of the lane dim -> need 128-aligned d_k.
    assert dk % 128 == 0, "d_k must be a multiple of 128 for lane-dense tiles"
    tq = min(tq, S)
    tkv = min(tkv, S)
    assert S % tq == 0 and S % tkv == 0, "seq len must divide attention tiles"
    scale = 1.0 / math.sqrt(dk)
    kernel = functools.partial(_flash_kernel, scale=scale, neg_inf=-1e9)
    cost = pl.CostEstimate(flops=4 * B * h * S * S * dk,
                           transcendentals=B * h * S * S,
                           bytes_accessed=4 * (4 * B * S * D + B * S * S))
    return pl.pallas_call(
        kernel,
        out_shape=jax.ShapeDtypeStruct((B, S, D), qkv.dtype),
        grid_spec=pltpu.PrefetchScalarGridSpec(
            num_scalar_prefetch=0,
            grid=(B, h, S // tq, S // tkv),
            in_specs=[
                pl.BlockSpec((1, 1, tq, dk),
                             lambda b, hd, qi, ki: (0, b, qi, hd)),   # Q
                pl.BlockSpec((1, 1, tkv, dk),
                             lambda b, hd, qi, ki: (1, b, ki, hd)),   # K
                pl.BlockSpec((1, 1, tkv, dk),
                             lambda b, hd, qi, ki: (2, b, ki, hd)),   # V
                # mask has no head dim -> same block for every head
                pl.BlockSpec((1, tq, tkv),
                             lambda b, hd, qi, ki: (b, qi, ki)),
            ],
            out_specs=pl.BlockSpec((1, tq, dk),
                                   lambda b, hd, qi, ki: (b, qi, hd)),
            scratch_shapes=[pltpu.VMEM((tq, 1), jnp.float32),
                            pltpu.VMEM((tq, 1), jnp.float32),
                            pltpu.VMEM((tq, dk), jnp.float32)]),
        compiler_params=pltpu.CompilerParams(
            dimension_semantics=("parallel", "parallel", "parallel",
                                 "arbitrary")),
        cost_estimate=cost,
    )(qkv, qkv, qkv, mask)


# ---------------------------------------------------------------------------
# Full MultiheadAttentionBlock forward
# ---------------------------------------------------------------------------
def multihead_attention_block(q, k, v, mask, w_q, w_k, w_v, w_o, h):
    """q, k, v: (B, S, D); mask: (B, 1, S, S) or (B, S, S); weights: (D, D)."""
    B, S, D = q.shape
    assert D % h == 0

    # Fused Q/K/V projections: one batched matmul over the stacked inputs.
    x3 = jnp.stack([q, k, v]).reshape(3, B * S, D)                # (3, B*S, D)
    w3 = jnp.stack([w_q, w_k, w_v])                               # (3, D, D)
    qkv = batched_linear_nobias(x3, w3).reshape(3, B, S, D)       # (3, B, S, D)

    mask_i = mask.reshape(B, S, S).astype(jnp.int32)

    ctx = flash_attention(qkv, mask_i, h)                         # (B, S, D)

    out = batched_linear_nobias(ctx.reshape(1, B * S, D), w_o[None, :, :])
    return out.reshape(B, S, D)


# ---------------------------------------------------------------------------
# Pure-JAX reference (PyTorch semantics, no dropout) for the correctness check.
# ---------------------------------------------------------------------------
def _reference(q, k, v, mask, w_q, w_k, w_v, w_o, h):
    B, S, D = q.shape
    dk = D // h
    hp = jax.lax.Precision.HIGHEST

    def proj(x, w):
        y = jnp.dot(x.reshape(B * S, D), w, precision=hp)
        return y.reshape(B, S, h, dk).transpose(0, 2, 1, 3)

    Q, K, V = proj(q, w_q), proj(k, w_k), proj(v, w_v)
    s = jnp.einsum('bhqd,bhkd->bhqk', Q, K, precision=hp) / math.sqrt(dk)
    s = jnp.where(mask.reshape(B, 1, S, S) != 0, s, -1e9)
    a = jax.nn.softmax(s, axis=-1)
    o = jnp.einsum('bhqk,bhkd->bhqd', a, V, precision=hp)
    o = o.transpose(0, 2, 1, 3).reshape(B * S, D)
    return jnp.dot(o, w_o, precision=hp).reshape(B, S, D)


if __name__ == "__main__":
    B, S, D, H = 2, 128, 256, 2          # d_k = 128 (lane-dense head blocks)

    key = jax.random.PRNGKey(0)
    kq, kk, kv, kwq, kwk, kwv, kwo = jax.random.split(key, 7)
    w_scale = 1.0 / math.sqrt(D)

    q = jax.random.normal(kq, (B, S, D), dtype=jnp.float32)
    k = jax.random.normal(kk, (B, S, D), dtype=jnp.float32)
    v = jax.random.normal(kv, (B, S, D), dtype=jnp.float32)
    w_q = jax.random.normal(kwq, (D, D), dtype=jnp.float32) * w_scale
    w_k = jax.random.normal(kwk, (D, D), dtype=jnp.float32) * w_scale
    w_v = jax.random.normal(kwv, (D, D), dtype=jnp.float32) * w_scale
    w_o = jax.random.normal(kwo, (D, D), dtype=jnp.float32) * w_scale

    # Causal boolean mask, broadcast over batch and heads (0 => masked out).
    causal = (jnp.arange(S)[:, None] >= jnp.arange(S)[None, :]).astype(jnp.int32)
    mask = jnp.broadcast_to(causal, (B, 1, S, S))

    out = multihead_attention_block(q, k, v, mask, w_q, w_k, w_v, w_o, H)
    out = jax.block_until_ready(out)

    expected = _reference(q, k, v, mask, w_q, w_k, w_v, w_o, H)
    assert out.shape == (B, S, D)
    assert jnp.allclose(out, expected, atol=2e-2, rtol=2e-2), (
        f"max abs err {jnp.max(jnp.abs(out - expected))}")

    print("KERNEL_OK")
</pallas_src>

<mosaic_0001>
module attributes {stable_mosaic.version = 11 : i64} {
  func.func @_bmm_kernel(%arg0: i32, %arg1: i32, %arg2: i32, %arg3: i32, %arg4: memref<1x256x256xf32, #tpu.memory_space<vmem>>, %arg5: memref<1x256x256xf32, #tpu.memory_space<vmem>>, %arg6: memref<1x256x256xf32, #tpu.memory_space<vmem>>, %arg7: memref<256x256xf32, #tpu.memory_space<vmem>>) attributes {dimension_semantics = [#tpu.dimension_semantics<parallel>, #tpu.dimension_semantics<parallel>, #tpu.dimension_semantics<parallel>, #tpu.dimension_semantics<arbitrary>], iteration_bounds = array<i64: 3, 1, 1, 1>, scalar_prefetch = 0 : i64, scratch_operands = 1 : i64, tpu.core_type = #tpu.core_type<tc>, window_params = [{transform_indices = @transform_0, window_bounds = array<i64: 1, 256, 256>}, {transform_indices = @transform_1, window_bounds = array<i64: 1, 256, 256>}, {transform_indices = @transform_2, window_bounds = array<i64: 1, 256, 256>}]} {
    %c0_i32 = arith.constant 0 : i32
    %0 = arith.cmpi eq, %arg3, %c0_i32 : i32
    %1 = arith.extui %0 : i1 to i32
    %c0_i32_0 = arith.constant 0 : i32
    %2 = arith.cmpi ne, %1, %c0_i32_0 : i32
    scf.if %2 {
      %cst_12 = arith.constant 0.000000e+00 : f32
      %14 = vector.broadcast %cst_12 : f32 to vector<256x256xf32>
      %c0_13 = arith.constant 0 : index
      %c0_14 = arith.constant 0 : index
      %15 = vector.load %arg7[%c0_13, %c0_14] : memref<256x256xf32, #tpu.memory_space<vmem>>, vector<256x256xf32>
      tpu.vector_store %arg7[%c0_13, %c0_14], %14 {strides = array<i32>} : memref<256x256xf32, #tpu.memory_space<vmem>>, vector<256x256xf32>,
    } else {
    }
    %c0 = arith.constant 0 : index
    %c0_1 = arith.constant 0 : index
    %3 = vector.load %arg7[%c0, %c0_1] : memref<256x256xf32, #tpu.memory_space<vmem>>, vector<256x256xf32>
    %c0_2 = arith.constant 0 : index
    %c0_3 = arith.constant 0 : index
    %c0_4 = arith.constant 0 : index
    %4 = vector.load %arg4[%c0_2, %c0_3, %c0_4] : memref<1x256x256xf32, #tpu.memory_space<vmem>>, vector<1x256x256xf32>
    %5 = vector.shape_cast %4 : vector<1x256x256xf32> to vector<256x256xf32>
    %c0_5 = arith.constant 0 : index
    %c0_6 = arith.constant 0 : index
    %c0_7 = arith.constant 0 : index
    %6 = vector.load %arg5[%c0_5, %c0_6, %c0_7] : memref<1x256x256xf32, #tpu.memory_space<vmem>>, vector<1x256x256xf32>
    %7 = vector.shape_cast %6 : vector<1x256x256xf32> to vector<256x256xf32>
    %cst = arith.constant dense<0.000000e+00> : vector<256x256xf32>
    %8 = tpu.matmul %5, %7, %cst {dimension_numbers = #tpu.dot_dimension_numbers<[1], [0], [0], [1], [0, 0, 1, 1], [], []>} : vector<256x256xf32>, vector<256x256xf32>, vector<256x256xf32> -> vector<256x256xf32>
    %9 = arith.addf %3, %8 : vector<256x256xf32>
    %c0_8 = arith.constant 0 : index
    %c0_9 = arith.constant 0 : index
    %10 = vector.load %arg7[%c0_8, %c0_9] : memref<256x256xf32, #tpu.memory_space<vmem>>, vector<256x256xf32>
    tpu.vector_store %arg7[%c0_8, %c0_9], %9 {strides = array<i32>} : memref<256x256xf32, #tpu.memory_space<vmem>>, vector<256x256xf32>,
    %c0_i32_10 = arith.constant 0 : i32
    %11 = arith.cmpi eq, %arg3, %c0_i32_10 : i32
    %12 = arith.extui %11 : i1 to i32
    %c0_i32_11 = arith.constant 0 : i32
    %13 = arith.cmpi ne, %12, %c0_i32_11 : i32
    scf.if %13 {
      %c0_12 = arith.constant 0 : index
      %c0_13 = arith.constant 0 : index
      %14 = vector.load %arg7[%c0_12, %c0_13] : memref<256x256xf32, #tpu.memory_space<vmem>>, vector<256x256xf32>
      %c0_14 = arith.constant 0 : index
      %c0_15 = arith.constant 0 : index
      %c0_16 = arith.constant 0 : index
      %15 = vector.load %arg6[%c0_14, %c0_15, %c0_16] : memref<1x256x256xf32, #tpu.memory_space<vmem>>, vector<1x256x256xf32>
      %16 = vector.shape_cast %15 : vector<1x256x256xf32> to vector<256x256xf32>
      %17 = vector.shape_cast %14 : vector<256x256xf32> to vector<1x256x256xf32>
      tpu.vector_store %arg6[%c0_14, %c0_15, %c0_16], %17 {strides = array<i32>} : memref<1x256x256xf32, #tpu.memory_space<vmem>>, vector<1x256x256xf32>,
    } else {
    }
    return
  }
  func.func @transform_0(%arg0: i32, %arg1: i32, %arg2: i32, %arg3: i32) -> (i32, i32, i32) {
    %c0_i32 = arith.constant 0 : i32
    return %arg0, %arg1, %arg3 : i32, i32, i32
  }
  func.func @transform_1(%arg0: i32, %arg1: i32, %arg2: i32, %arg3: i32) -> (i32, i32, i32) {
    %c0_i32 = arith.constant 0 : i32
    return %arg0, %arg3, %arg2 : i32, i32, i32
  }
  func.func @transform_2(%arg0: i32, %arg1: i32, %arg2: i32, %arg3: i32) -> (i32, i32, i32) {
    %c0_i32 = arith.constant 0 : i32
    return %arg0, %arg1, %arg2 : i32, i32, i32
  }
}

</mosaic_0001>

<bundles_post_ra>
// kernel: tpu_custom_call.1
= control target key start
LH: loop header
LB: loop body
LE: loop exit
PB: predicated region body
PF: predicated region fallthrough
CT: control target
= control target key end

     0   :  { %7 = vsyncpa [#allocation4], 0  ;;  %s1880_s0 = inlined_call_operand.hbm [shape: f32[3,256,256], index: 0, kind: input, shape index: {}]   ;;  %s1881_s1 = inlined_call_operand.hbm [shape: f32[3,256,256], index: 1, kind: input, shape index: {}]   ;;  %s1882_s2 = inlined_call_operand.hbm [shape: f32[3,256,256], index: 2, kind: output, shape index: {}]  }
   0x1   :  { %9 = vsyncpa [#allocation4 + $0x1], 0 }
   0x2   :  { %10 = vsyncpa [#allocation7], 0 }
   0x3   :  { %12 = vsyncpa [#allocation7 + $0x1], 0 }
   0x4   :  { %13 = vsyncpa [#allocation5], 0 }
   0x5   :  { %15 = vsyncpa [#allocation5 + $0x1], 0  ;;  %s1497_s9 = smov 0   ;;  %s1499_s10 = smov 0  }
   0x6   :  { %s1501_s11 = smov 0   ;;  %s1503_s12 = smov 0  }
   0x7   :  { %s1505_s13 = smov 0   ;;  %s1507_s14 = smov 0  }
   0x8 LB: > { %s1176_s15 = sadd.s32 4294967295, %s1473_s14   ;;  %s1177_s16 = sadd.s32 4294967294, %s1473_s14   ;;  %s1473_s14 = sphi %s1507_s14, %s21_s14   ;;  %s1469_s13 = sphi %s1505_s13, %s1893_s13   ;;  %s1465_s12 = sphi %s1503_s12, %s1892_s12   ;;  %s1461_s11 = sphi %s1501_s11, %s1891_s11   ;;  %s1457_s10 = sphi %s1499_s10, %s1890_s10   ;;  %s1453_s9 = sphi %s1497_s9, %s1889_s9  }
   0x9   : > { %s47_s17 = sadd.s32 1, %s1469_s13  ;;  %s58_s18 = sadd.s32 1, %s1461_s11 }
   0xa   : > { %p49_p0 = scmp.ge.s32.totalorder %s47_s17, 3  ;;  %p65_p1 = scmp.ne.s32.totalorder %s1461_s11, %s1457_s10 }
   0xb   : > { %p66_p2 = scmp.eq.s32.totalorder %s1473_s14, 0  ;;  %p71_p3 = scmp.ne.s32.totalorder %s1457_s10, %s1453_s9 }
   0xc   : > { %s1895_s17 = smov (%p49_p0, %s47_s17), 0  ;;  %p72_p5 = scmp.eq.s32.totalorder %s1176_s15, 0 }
   0xd   : > { %p1538_p4 = por %p66_p2, %p65_p1  ;;  %s51_s20 = ssub.s32 %s1469_s13, %s1895_s17 }
   0xe   : > { %p129_p6 = scmp.eq.s32.totalorder %s1176_s15, 2  ;;  %p56_p7 = scmp.eq.s32.totalorder %s51_s20, 0 }
   0xf   : > { %p1544_p8 = por %p72_p5, %p71_p3  ;;  %p135_p10 = scmp.eq.s32.totalorder %s1177_s16, 2 }
  0x10   : > { %p1548_p9 = por %p129_p6, %p65_p1  ;;  %p1279_p12 = scmp.lt.s32.totalorder %s1473_s14, 3 }
  0x11   : > { %s1553_s23 = scalar_select %p56_p7, %s1461_s11, %s58_s18  }
  0x12   : > { %p1555_p11 = por %p135_p10, %p71_p3  ;;  %s1561_s25 = sand.u32 1, %s1461_s11  }
  0x13   : > { %s1180_s26 = sshll.u32 %s1561_s25, 9  ;;  %s1195_s27 = sshll.u32 %s1469_s13, 13 }
  0x14   : > { %s170_s30 = scalar_lea.hbm %s1880_s0, %s1195_s27  ;;  %s159_s3 = scalar_lea.vmem [#allocation3], %s1180_s26 }
  0x15   : > { %s171_s4 = sshll.u32 %s159_s3, 4  ;;  %p1574_p13 = pnand %p1279_p12, %p1538_p4  ;;  %s172_s4 = int_to_ptr.vmem [resolvable:$true] %s171_s4 }
  0x16   : > { %p1186_p0 = scmp.ge.s32.totalorder %s1473_s14, 1  ;;  %s156_s6 = scalar_lea.sflag [#allocation4], %s1561_s25 }
  0x17   : > { %p1335_p1 = pneg %p1574_p13  ;;  %s1346_s7 = scalar_lea.vmem %s172_s4, 8192 }
  0x18   : > { %p1347_p2 = scmp.ne.s32.totalorder %s172_s4, %s1346_s7  ;;  %s1475_s8 = smov [#allocation3]  }
  0x19   : > { %s1351_s15 = sshll.u32 %s1475_s8, 4  ;;  %s1352_s15 = int_to_ptr.vmem [resolvable:$false] %s1351_s15 }
  0x1a   : > { %p1349_p3 = pnand %p1347_p2, %p1335_p1  ;;  %s1353_s16 = scalar_lea.vmem %s1352_s15, 16384 }
  0x1b   : > { %p1354_p4 = scmp.lt.s32.totalorder %s172_s4, %s1352_s15  ;;  %p1355_p6 = scmp.lt.s32.totalorder %s1353_s16, %s1346_s7 }
  0x1c   : > { %p1350_p5 = pneg %p1349_p3 }
  0x1d   : > { %p1356_p7 = por %p1355_p6, %p1354_p4 }
  0x1f   : > { %p1357_p10 = pnand %p1356_p7, %p1350_p5 }
  0x21   : > { %1360 = shalt.err (!%p1357_p10)
}
  0x22   : > { %s1476_s18 = smov 256   ;;  %s1477_s19 = smov 16  }
  0x23   : > { %1271 = dma.hbm_to_vmem [thread:$0]  (!%p1574_p13), %s170_s30, 8192, %s172_s4, %s156_s6, %s1476_s18, %s1476_s18, %s1477_s19  }
  0x24   : > { %p205_p12 = scmp.lt.s32.totalorder %s1473_s14, 4  ;;  %s196_s29 = scalar_lea.hbm %s1881_s1, %s1195_s27 }
  0x25   : > { %s185_s7 = scalar_lea.vmem [#allocation6], %s1180_s26  ;;  %s182_s15 = scalar_lea.sflag [#allocation7], %s1561_s25 }
  0x26   : > { %p1595_p2 = pnand %p1186_p0, %p205_p12  ;;  %s197_s8 = sshll.u32 %s185_s7, 4  ;;  %s198_s8 = int_to_ptr.vmem [resolvable:$true] %s197_s8 }
  0x27   : > { %s1374_s16 = scalar_lea.vmem %s198_s8, 8192  ;;  %s1478_s30 = smov [#allocation6]  }
  0x28   : > { %p1375_p3 = scmp.ne.s32.totalorder %s198_s8, %s1374_s16  ;;  %s1379_s4 = sshll.u32 %s1478_s30, 4  ;;  %s1380_s4 = int_to_ptr.vmem [resolvable:$false] %s1379_s4 }
  0x29   : > { %s1381_s27 = scalar_lea.vmem %s1380_s4, 16384  ;;  %p1382_p6 = scmp.lt.s32.totalorder %s198_s8, %s1380_s4 }
  0x2a   : > { %p1377_p5 = pnand %p1375_p3, %p1335_p1  ;;  %p1383_p0 = scmp.lt.s32.totalorder %s1381_s27, %s1374_s16 }
  0x2c   : > { %p1378_p4 = pneg %p1377_p5  ;;  %p1384_p7 = por %p1383_p0, %p1382_p6 }
  0x2e   : > { %p1385_p10 = pnand %p1384_p7, %p1378_p4 }
  0x30   : > { %1388 = shalt.err (!%p1385_p10)
}
  0x31   : > { %1274 = dma.hbm_to_vmem [thread:$0]  (!%p1574_p13), %s196_s29, 8192, %s198_s8, %s182_s15, %s1476_s18, %s1476_s18, %s1477_s19  }
  0x32   : > { %209 = sbr.rel (%p1595_p2) target bundleno = 393 (0x189), region = 28  ;;  %s1610_s25 = sand.u32 (!%p1595_p2), 1, %s1457_s10  }
  0x33   : > { %s1613_s26 = sshll.u32 (!%p1595_p2), %s1610_s25, 9  ;;  %s212_s6 = scalar_lea.sflag (!%p1595_p2), [#allocation4], %s1610_s25 }
  0x34   : > { %s1617_s20 = scalar_lea.vmem (!%p1595_p2), [#allocation3], %s1613_s26 }
  0x37   : > { %1440 = dma.done.wait (%p1544_p8), %s212_s6, 8192  }
  0x38   : > { %1442 = vsyncadd (%p1544_p8), %s212_s6, 4294959104  ;;  %s221_s5 = scalar_lea.sflag [#allocation7], %s1610_s25  ;;  %s1625_s18 = scalar_lea.vmem [#allocation6], %s1613_s26 }
  0x39   : > { %1444 = dma.done.wait (%p1544_p8), %s221_s5, 8192  }
  0x3a   : > { %1446 = vsyncadd (%p1544_p8), %s221_s5, 4294959104  ;;  %v483_v0 = vld [vmem:[%s1625_s18 + $0xf8] sm:$0xff]  ;;  %v482_v1 = vld [vmem:[%s1625_s18 + $0xf0] sm:$0xff]  ;;  %s1760_s21 = scalar_lea.vmem [#allocation8], %s1613_s26  ;;  %s1197_s19 = sshll.u32 %s1465_s12, 13 }
  0x3b   : > { %v481_v2 = vld [vmem:[%s1625_s18 + $0xe8] sm:$0xff]  ;;  %516 = vmatprep.subr.mxu0 %v483_v0  ;;  %1198 = vmatprep.subr.mxu1 %v483_v0  ;;  %v480_v3 = vld [vmem:[%s1625_s18 + $0xe0] sm:$0xff]  ;;  %v479_v4 = vld [vmem:[%s1625_s18 + $0xd8] sm:$0xff]  ;;  %s1051_s28 = sshll.u32 %s1760_s21, 4  ;;  %s1827_s7 = scalar_lea.hbm %s1882_s2, %s1197_s19  ;;  %s1829_s28 = int_to_ptr.vmem [resolvable:$true] %s1051_s28 }
  0x3c   : > { %517 = vmatpush1.msra.mxu0 %v482_v1  ;;  %1230 = vmatpush1.msra.mxu1 %v482_v1  ;;  %v478_v5 = vld [vmem:[%s1625_s18 + $0xd0] sm:$0xff]  ;;  %v477_v6 = vld [vmem:[%s1625_s18 + $0xc8] sm:$0xff]  ;;  %v476_v7 = vld [vmem:[%s1625_s18 + $0xc0] sm:$0xff]  ;;  %s1033_s12 = scalar_lea.sflag [#allocation5], %s1610_s25  ;;  %s1389_s8 = scalar_lea.vmem %s1829_s28, 8192 }
  0x3d   : > { %518 = vmatprep.subr.mxu0 %v481_v2  ;;  %1199 = vmatprep.subr.mxu1 %v481_v2  ;;  %v475_v8 = vld [vmem:[%s1625_s18 + $0xb8] sm:$0xff]  ;;  %v474_v9 = vld [vmem:[%s1625_s18 + $0xb0] sm:$0xff]  ;;  %v473_v10 = vld [vmem:[%s1625_s18 + $0xa8] sm:$0xff]  ;;  %p1390_p8 = scmp.ne.s32.totalorder %s1829_s28, %s1389_s8  ;;  %s1479_s15 = smov [#allocation8]  }
  0x3e   : > { %519 = vmatpush1.msra.mxu0 %v480_v3  ;;  %1231 = vmatpush1.msra.mxu1 %v480_v3  ;;  %v472_v11 = vld [vmem:[%s1625_s18 + $0xa0] sm:$0xff]  ;;  %v471_v12 = vld [vmem:[%s1625_s18 + $0x98] sm:$0xff]  ;;  %v470_v13 = vld [vmem:[%s1625_s18 + $0x90] sm:$0xff]  ;;  %s1393_s16 = sshll.u32 %s1479_s15, 4  ;;  %s1394_s16 = int_to_ptr.vmem [resolvable:$false] %s1393_s16 }
  0x3f   : > { %520 = vmatprep.subr.mxu0 %v479_v4  ;;  %1200 = vmatprep.subr.mxu1 %v479_v4  ;;  %v469_v14 = vld [vmem:[%s1625_s18 + $0x88] sm:$0xff]  ;;  %v468_v15 = vld [vmem:[%s1625_s18 + $0x80] sm:$0xff]  ;;  %v467_v16 = vld [vmem:[%s1625_s18 + $0x78] sm:$0xff]  ;;  %p1391_p13 = pnand %p1390_p8, %p1548_p9  ;;  %s1395_s30 = scalar_lea.vmem %s1394_s16, 16384 }
  0x40   : > { %521 = vmatpush1.msra.mxu0 %v478_v5  ;;  %1232 = vmatpush1.msra.mxu1 %v478_v5  ;;  %v466_v17 = vld [vmem:[%s1625_s18 + $0x70] sm:$0xff]  ;;  %v465_v18 = vld [vmem:[%s1625_s18 + $0x68] sm:$0xff]  ;;  %v464_v19 = vld [vmem:[%s1625_s18 + $0x60] sm:$0xff]  ;;  %p1396_p12 = scmp.lt.s32.totalorder %s1829_s28, %s1394_s16  ;;  %p1397_p2 = scmp.lt.s32.totalorder %s1395_s30, %s1389_s8 }
  0x41   : > { %522 = vmatprep.subr.mxu0 %v477_v6  ;;  %1201 = vmatprep.subr.mxu1 %v477_v6  ;;  %v463_v20 = vld [vmem:[%s1625_s18 + $0x58] sm:$0xff]  ;;  %v462_v21 = vld [vmem:[%s1625_s18 + $0x50] sm:$0xff]  ;;  %v461_v22 = vld [vmem:[%s1625_s18 + $0x48] sm:$0xff]  ;;  %p1392_p1 = pneg %p1391_p13 }
  0x42   : > { %523 = vmatpush1.msra.mxu0 %v476_v7  ;;  %1233 = vmatpush1.msra.mxu1 %v476_v7  ;;  %v460_v23 = vld [vmem:[%s1625_s18 + $0x40] sm:$0xff]  ;;  %v459_v24 = vld [vmem:[%s1625_s18 + $0x38] sm:$0xff]  ;;  %v458_v25 = vld [vmem:[%s1625_s18 + $0x30] sm:$0xff]  ;;  %p1398_p3 = por %p1397_p2, %p1396_p12 }
  0x43   : > { %524 = vmatprep.subr.mxu0 %v475_v8  ;;  %1202 = vmatprep.subr.mxu1 %v475_v8  ;;  %v457_v26 = vld [vmem:[%s1625_s18 + $0x28] sm:$0xff]  ;;  %v456_v27 = vld [vmem:[%s1625_s18 + $0x20] sm:$0xff]  ;;  %v455_v28 = vld [vmem:[%s1625_s18 + $0x18] sm:$0xff] }
  0x44   : > { %525 = vmatpush1.msra.mxu0 %v474_v9  ;;  %1234 = vmatpush1.msra.mxu1 %v474_v9  ;;  %v454_v29 = vld [vmem:[%s1625_s18 + $0x10] sm:$0xff]  ;;  %v453_v30 = vld [vmem:[%s1625_s18 + $0x8] sm:$0xff]  ;;  %v452_v31 = vld [vmem:[%s1625_s18] sm:$0xff]  ;;  %p1399_p5 = pnand %p1398_p3, %p1392_p1 }
  0x45   : > { %526 = vmatprep.subr.mxu0 %v473_v10  ;;  %1203 = vmatprep.subr.mxu1 %v473_v10  ;;  %v515_v32 = vld [vmem:[%s1625_s18 + $0x1f8] sm:$0xff]  ;;  %v514_v33 = vld [vmem:[%s1625_s18 + $0x1f0] sm:$0xff]  ;;  %v513_v34 = vld [vmem:[%s1625_s18 + $0x1e8] sm:$0xff] }
  0x46   : > { %527 = vmatpush1.msra.mxu0 %v472_v11  ;;  %1235 = vmatpush1.msra.mxu1 %v472_v11  ;;  %v512_v35 = vld [vmem:[%s1625_s18 + $0x1e0] sm:$0xff]  ;;  %v511_v36 = vld [vmem:[%s1625_s18 + $0x1d8] sm:$0xff]  ;;  %v510_v37 = vld [vmem:[%s1625_s18 + $0x1d0] sm:$0xff] }
  0x47   : > { %528 = vmatprep.subr.mxu0 %v471_v12  ;;  %1204 = vmatprep.subr.mxu1 %v471_v12  ;;  %v509_v38 = vld [vmem:[%s1625_s18 + $0x1c8] sm:$0xff]  ;;  %v508_v39 = vld [vmem:[%s1625_s18 + $0x1c0] sm:$0xff]  ;;  %v507_v40 = vld [vmem:[%s1625_s18 + $0x1b8] sm:$0xff] }
  0x48   : > { %529 = vmatpush1.msra.mxu0 %v470_v13  ;;  %1236 = vmatpush1.msra.mxu1 %v470_v13  ;;  %v506_v41 = vld [vmem:[%s1625_s18 + $0x1b0] sm:$0xff]  ;;  %v505_v42 = vld [vmem:[%s1625_s18 + $0x1a8] sm:$0xff]  ;;  %v504_v43 = vld [vmem:[%s1625_s18 + $0x1a0] sm:$0xff] }
  0x49   : > { %530 = vmatprep.subr.mxu0 %v469_v14  ;;  %1205 = vmatprep.subr.mxu1 %v469_v14  ;;  %v503_v44 = vld [vmem:[%s1625_s18 + $0x198] sm:$0xff]  ;;  %v502_v45 = vld [vmem:[%s1625_s18 + $0x190] sm:$0xff]  ;;  %v501_v46 = vld [vmem:[%s1625_s18 + $0x188] sm:$0xff] }
  0x4a   : > { %531 = vmatpush1.msra.mxu0 %v468_v15  ;;  %1237 = vmatpush1.msra.mxu1 %v468_v15  ;;  %v500_v47 = vld [vmem:[%s1625_s18 + $0x180] sm:$0xff]  ;;  %v499_v48 = vld [vmem:[%s1625_s18 + $0x178] sm:$0xff]  ;;  %v498_v49 = vld [vmem:[%s1625_s18 + $0x170] sm:$0xff] }
  0x4b   : > { %532 = vmatprep.subr.mxu0 %v467_v16  ;;  %1206 = vmatprep.subr.mxu1 %v467_v16  ;;  %v497_v50 = vld [vmem:[%s1625_s18 + $0x168] sm:$0xff]  ;;  %v496_v51 = vld [vmem:[%s1625_s18 + $0x160] sm:$0xff]  ;;  %v495_v52 = vld [vmem:[%s1625_s18 + $0x158] sm:$0xff] }
  0x4c   : > { %533 = vmatpush1.msra.mxu0 %v466_v17  ;;  %1238 = vmatpush1.msra.mxu1 %v466_v17  ;;  %v494_v53 = vld [vmem:[%s1625_s18 + $0x150] sm:$0xff]  ;;  %v493_v54 = vld [vmem:[%s1625_s18 + $0x148] sm:$0xff]  ;;  %v492_v55 = vld [vmem:[%s1625_s18 + $0x140] sm:$0xff] }
  0x4d   : > { %534 = vmatprep.subr.mxu0 %v465_v18  ;;  %1207 = vmatprep.subr.mxu1 %v465_v18  ;;  %v491_v56 = vld [vmem:[%s1625_s18 + $0x138] sm:$0xff]  ;;  %v490_v57 = vld [vmem:[%s1625_s18 + $0x130] sm:$0xff]  ;;  %v489_v58 = vld [vmem:[%s1625_s18 + $0x128] sm:$0xff] }
  0x4e   : > { %535 = vmatpush1.msra.mxu0 %v464_v19  ;;  %1239 = vmatpush1.msra.mxu1 %v464_v19  ;;  %v488_v59 = vld [vmem:[%s1625_s18 + $0x120] sm:$0xff]  ;;  %v487_v60 = vld [vmem:[%s1625_s18 + $0x118] sm:$0xff]  ;;  %v486_v61 = vld [vmem:[%s1625_s18 + $0x110] sm:$0xff] }
  0x4f   : > { %536 = vmatprep.subr.mxu0 %v463_v20  ;;  %1208 = vmatprep.subr.mxu1 %v463_v20  ;;  %v485_v62 = vld [vmem:[%s1625_s18 + $0x108] sm:$0xff]  ;;  %v484_v63 = vld [vmem:[%s1625_s18 + $0x100] sm:$0xff]  ;;  %v391_v4 = vld [vmem:[%s1617_s20 + $0x18] sm:$0xff] }
  0x50   : > { %537 = vmatpush1.msra.mxu0 %v462_v21  ;;  %1240 = vmatpush1.msra.mxu1 %v462_v21  ;;  %v389_v0 = vld [vmem:[%s1617_s20 + $0x8] sm:$0xff]  ;;  %v388_v2 = vld [vmem:[%s1617_s20] sm:$0xff]  ;;  %v423_v5 = vld [vmem:[%s1617_s20 + $0x118] sm:$0xff] }
  0x51   : > { %538 = vmatprep.subr.mxu0 %v461_v22  ;;  %1209 = vmatprep.subr.mxu1 %v461_v22  ;;  %v421_v1 = vld [vmem:[%s1617_s20 + $0x108] sm:$0xff]  ;;  %v420_v3 = vld [vmem:[%s1617_s20 + $0x100] sm:$0xff]  ;;  %v390_v6 = vld [vmem:[%s1617_s20 + $0x10] sm:$0xff] }
  0x52   : > { %539 = vmatpush1.msra.mxu0 %v460_v23  ;;  %1241 = vmatpush1.msra.mxu1 %v460_v23  ;;  %v422_v7 = vld [vmem:[%s1617_s20 + $0x110] sm:$0xff]  ;;  %v393_v8 = vld [vmem:[%s1617_s20 + $0x28] sm:$0xff]  ;;  %v392_v10 = vld [vmem:[%s1617_s20 + $0x20] sm:$0xff] }
  0x53   : > { %540 = vmatprep.subr.mxu0 %v459_v24  ;;  %1210 = vmatprep.subr.mxu1 %v459_v24  ;;  %v425_v9 = vld [vmem:[%s1617_s20 + $0x128] sm:$0xff]  ;;  %v424_v11 = vld [vmem:[%s1617_s20 + $0x120] sm:$0xff]  ;;  %v395_v12 = vld [vmem:[%s1617_s20 + $0x38] sm:$0xff] }
  0x54   : > { %541 = vmatpush1.msra.mxu0 %v458_v25  ;;  %1242 = vmatpush1.msra.mxu1 %v458_v25  ;;  %v427_v13 = vld [vmem:[%s1617_s20 + $0x138] sm:$0xff]  ;;  %v394_v14 = vld [vmem:[%s1617_s20 + $0x30] sm:$0xff]  ;;  %v397_v16 = vld [vmem:[%s1617_s20 + $0x48] sm:$0xff] }
  0x55   : > { %542 = vmatprep.subr.mxu0 %v457_v26  ;;  %1211 = vmatprep.subr.mxu1 %v457_v26  ;;  %v426_v15 = vld [vmem:[%s1617_s20 + $0x130] sm:$0xff]  ;;  %v429_v17 = vld [vmem:[%s1617_s20 + $0x148] sm:$0xff]  ;;  %v396_v18 = vld [vmem:[%s1617_s20 + $0x40] sm:$0xff] }
  0x56   : > { %543 = vmatpush1.msra.mxu0 %v456_v27  ;;  %1243 = vmatpush1.msra.mxu1 %v456_v27  ;;  %v428_v19 = vld [vmem:[%s1617_s20 + $0x140] sm:$0xff]  ;;  %v399_v20 = vld [vmem:[%s1617_s20 + $0x58] sm:$0xff]  ;;  %v398_v22 = vld [vmem:[%s1617_s20 + $0x50] sm:$0xff] }
  0x57   : > { %544 = vmatprep.subr.mxu0 %v455_v28  ;;  %1212 = vmatprep.subr.mxu1 %v455_v28  ;;  %v431_v21 = vld [vmem:[%s1617_s20 + $0x158] sm:$0xff]  ;;  %v430_v23 = vld [vmem:[%s1617_s20 + $0x150] sm:$0xff]  ;;  %v401_v24 = vld [vmem:[%s1617_s20 + $0x68] sm:$0xff] }
  0x58   : > { %545 = vmatpush1.msra.mxu0 %v454_v29  ;;  %1244 = vmatpush1.msra.mxu1 %v454_v29  ;;  %v433_v25 = vld [vmem:[%s1617_s20 + $0x168] sm:$0xff]  ;;  %v400_v26 = vld [vmem:[%s1617_s20 + $0x60] sm:$0xff]  ;;  %v403_v28 = vld [vmem:[%s1617_s20 + $0x78] sm:$0xff] }
  0x59   : > { %546 = vmatprep.subr.mxu0 %v453_v30  ;;  %1213 = vmatprep.subr.mxu1 %v453_v30  ;;  %v432_v27 = vld [vmem:[%s1617_s20 + $0x160] sm:$0xff]  ;;  %v435_v29 = vld [vmem:[%s1617_s20 + $0x178] sm:$0xff]  ;;  %v402_v30 = vld [vmem:[%s1617_s20 + $0x70] sm:$0xff] }
  0x5a   : > { %547 = vmatpush1.msra.mxu0 %v452_v31  ;;  %1245 = vmatpush1.msra.mxu1 %v452_v31  ;;  %v434_v31 = vld [vmem:[%s1617_s20 + $0x170] sm:$0xff] }
  0x5b   : > { %548 = vmatprep.subr.mxu0 %v515_v32  ;;  %1214 = vmatprep.subr.mxu1 %v515_v32  ;;  %v405_v32 = vld [vmem:[%s1617_s20 + $0x88] sm:$0xff] }
  0x5c   : > { %549 = vmatpush2.msra.mxu0 %v514_v33  ;;  %1246 = vmatpush2.msra.mxu1 %v514_v33  ;;  %v437_v33 = vld [vmem:[%s1617_s20 + $0x188] sm:$0xff] }
  0x5d   : > { %550 = vmatprep.subr.mxu0 %v513_v34  ;;  %1215 = vmatprep.subr.mxu1 %v513_v34  ;;  %v404_v34 = vld [vmem:[%s1617_s20 + $0x80] sm:$0xff] }
  0x5e   : > { %551 = vmatpush2.msra.mxu0 %v512_v35  ;;  %1247 = vmatpush2.msra.mxu1 %v512_v35  ;;  %v436_v35 = vld [vmem:[%s1617_s20 + $0x180] sm:$0xff] }
  0x5f   : > { %552 = vmatprep.subr.mxu0 %v511_v36  ;;  %1216 = vmatprep.subr.mxu1 %v511_v36  ;;  %v407_v36 = vld [vmem:[%s1617_s20 + $0x98] sm:$0xff] }
  0x60   : > { %553 = vmatpush2.msra.mxu0 %v510_v37  ;;  %1248 = vmatpush2.msra.mxu1 %v510_v37  ;;  %v439_v37 = vld [vmem:[%s1617_s20 + $0x198] sm:$0xff] }
  0x61   : > { %554 = vmatprep.subr.mxu0 %v509_v38  ;;  %1217 = vmatprep.subr.mxu1 %v509_v38  ;;  %v406_v38 = vld [vmem:[%s1617_s20 + $0x90] sm:$0xff] }
  0x62   : > { %555 = vmatpush2.msra.mxu0 %v508_v39  ;;  %1249 = vmatpush2.msra.mxu1 %v508_v39  ;;  %v438_v39 = vld [vmem:[%s1617_s20 + $0x190] sm:$0xff] }
  0x63   : > { %556 = vmatprep.subr.mxu0 %v507_v40  ;;  %1218 = vmatprep.subr.mxu1 %v507_v40  ;;  %v409_v40 = vld [vmem:[%s1617_s20 + $0xa8] sm:$0xff] }
  0x64   : > { %557 = vmatpush2.msra.mxu0 %v506_v41  ;;  %1250 = vmatpush2.msra.mxu1 %v506_v41  ;;  %v441_v41 = vld [vmem:[%s1617_s20 + $0x1a8] sm:$0xff] }
  0x65   : > { %558 = vmatprep.subr.mxu0 %v505_v42  ;;  %1219 = vmatprep.subr.mxu1 %v505_v42  ;;  %v408_v42 = vld [vmem:[%s1617_s20 + $0xa0] sm:$0xff] }
  0x66   : > { %559 = vmatpush2.msra.mxu0 %v504_v43  ;;  %1251 = vmatpush2.msra.mxu1 %v504_v43  ;;  %v440_v43 = vld [vmem:[%s1617_s20 + $0x1a0] sm:$0xff] }
  0x67   : > { %560 = vmatprep.subr.mxu0 %v503_v44  ;;  %1220 = vmatprep.subr.mxu1 %v503_v44  ;;  %v411_v44 = vld [vmem:[%s1617_s20 + $0xb8] sm:$0xff] }
  0x68   : > { %561 = vmatpush2.msra.mxu0 %v502_v45  ;;  %1252 = vmatpush2.msra.mxu1 %v502_v45  ;;  %v443_v45 = vld [vmem:[%s1617_s20 + $0x1b8] sm:$0xff] }
  0x69   : > { %562 = vmatprep.subr.mxu0 %v501_v46  ;;  %1221 = vmatprep.subr.mxu1 %v501_v46  ;;  %v410_v46 = vld [vmem:[%s1617_s20 + $0xb0] sm:$0xff] }
  0x6a   : > { %563 = vmatpush2.msra.mxu0 %v500_v47  ;;  %1253 = vmatpush2.msra.mxu1 %v500_v47  ;;  %v442_v47 = vld [vmem:[%s1617_s20 + $0x1b0] sm:$0xff] }
  0x6b   : > { %564 = vmatprep.subr.mxu0 %v499_v48  ;;  %1222 = vmatprep.subr.mxu1 %v499_v48  ;;  %v413_v48 = vld [vmem:[%s1617_s20 + $0xc8] sm:$0xff] }
  0x6c   : > { %565 = vmatpush2.msra.mxu0 %v498_v49  ;;  %1254 = vmatpush2.msra.mxu1 %v498_v49  ;;  %v445_v49 = vld [vmem:[%s1617_s20 + $0x1c8] sm:$0xff] }
  0x6d   : > { %566 = vmatprep.subr.mxu0 %v497_v50  ;;  %1223 = vmatprep.subr.mxu1 %v497_v50  ;;  %v412_v50 = vld [vmem:[%s1617_s20 + $0xc0] sm:$0xff] }
  0x6e   : > { %567 = vmatpush2.msra.mxu0 %v496_v51  ;;  %1255 = vmatpush2.msra.mxu1 %v496_v51  ;;  %v444_v51 = vld [vmem:[%s1617_s20 + $0x1c0] sm:$0xff] }
  0x6f   : > { %568 = vmatprep.subr.mxu0 %v495_v52  ;;  %1224 = vmatprep.subr.mxu1 %v495_v52  ;;  %v415_v52 = vld [vmem:[%s1617_s20 + $0xd8] sm:$0xff] }
  0x70   : > { %569 = vmatpush2.msra.mxu0 %v494_v53  ;;  %1256 = vmatpush2.msra.mxu1 %v494_v53  ;;  %v447_v53 = vld [vmem:[%s1617_s20 + $0x1d8] sm:$0xff] }
  0x71   : > { %570 = vmatprep.subr.mxu0 %v493_v54  ;;  %1225 = vmatprep.subr.mxu1 %v493_v54  ;;  %v414_v54 = vld [vmem:[%s1617_s20 + $0xd0] sm:$0xff] }
  0x72   : > { %571 = vmatpush2.msra.mxu0 %v492_v55  ;;  %1257 = vmatpush2.msra.mxu1 %v492_v55  ;;  %v446_v55 = vld [vmem:[%s1617_s20 + $0x1d0] sm:$0xff] }
  0x73   : > { %572 = vmatprep.subr.mxu0 %v491_v56  ;;  %1226 = vmatprep.subr.mxu1 %v491_v56  ;;  %v417_v56 = vld [vmem:[%s1617_s20 + $0xe8] sm:$0xff] }
  0x74   : > { %573 = vmatpush2.msra.mxu0 %v490_v57  ;;  %1258 = vmatpush2.msra.mxu1 %v490_v57  ;;  %v449_v57 = vld [vmem:[%s1617_s20 + $0x1e8] sm:$0xff] }
  0x75   : > { %574 = vmatprep.subr.mxu0 %v489_v58  ;;  %1227 = vmatprep.subr.mxu1 %v489_v58  ;;  %v416_v58 = vld [vmem:[%s1617_s20 + $0xe0] sm:$0xff] }
  0x76   : > { %575 = vmatpush2.msra.mxu0 %v488_v59  ;;  %1259 = vmatpush2.msra.mxu1 %v488_v59  ;;  %v448_v59 = vld [vmem:[%s1617_s20 + $0x1e0] sm:$0xff] }
  0x77   : > { %576 = vmatprep.subr.mxu0 %v487_v60  ;;  %1228 = vmatprep.subr.mxu1 %v487_v60  ;;  %v419_v60 = vld [vmem:[%s1617_s20 + $0xf8] sm:$0xff] }
  0x78   : > { %577 = vmatpush2.msra.mxu0 %v486_v61  ;;  %1260 = vmatpush2.msra.mxu1 %v486_v61  ;;  %v451_v61 = vld [vmem:[%s1617_s20 + $0x1f8] sm:$0xff] }
  0x79   : > { %578 = vmatprep.subr.mxu0 %v485_v62  ;;  %1229 = vmatprep.subr.mxu1 %v485_v62  ;;  %v418_v62 = vld [vmem:[%s1617_s20 + $0xf0] sm:$0xff] }
  0x7a   : > { %579 = vmatpush2.msra.mxu0 %v484_v63  ;;  %1261 = vmatpush2.msra.mxu1 %v484_v63  ;;  %v450_v63 = vld [vmem:[%s1617_s20 + $0x1f0] sm:$0xff] }
  0x7b   : > { %580 = vmatprep.mubr.f32.mxu0 %v389_v0  ;;  %676 = vmatprep.mubr.f32.mxu1 %v421_v1 }
  0x7c   : > { %581 = vmatmul.mubr.f32.vlgmr.msra.gmra.mxu0 %v388_v2  ;;  %677 = vmatmul.mubr.f32.vlgmr.msra.gmra.mxu1 %v420_v3 }
  0x7d   : > { %586 = vmatprep.mubr.f32.mxu0 %v391_v4  ;;  %682 = vmatprep.mubr.f32.mxu1 %v423_v5 }
  0x80   : > { %587 = vmatmul.mubr.f32.gmra.mxu0 %v390_v6  ;;  %683 = vmatmul.mubr.f32.gmra.mxu1 %v422_v7 }
  0x81   : > { %592 = vmatprep.mubr.f32.mxu0 %v393_v8  ;;  %688 = vmatprep.mubr.f32.mxu1 %v425_v9 }
  0x84   : > { %593 = vmatmul.mubr.f32.gmra.mxu0 %v392_v10  ;;  %689 = vmatmul.mubr.f32.gmra.mxu1 %v424_v11 }
  0x85   : > { %598 = vmatprep.mubr.f32.mxu0 %v395_v12  ;;  %694 = vmatprep.mubr.f32.mxu1 %v427_v13 }
  0x88   : > { %599 = vmatmul.mubr.f32.gmra.mxu0 %v394_v14  ;;  %695 = vmatmul.mubr.f32.gmra.mxu1 %v426_v15 }
  0x89   : > { %604 = vmatprep.mubr.f32.mxu0 %v397_v16  ;;  %700 = vmatprep.mubr.f32.mxu1 %v429_v17 }
  0x8c   : > { %605 = vmatmul.mubr.f32.gmra.mxu0 %v396_v18  ;;  %701 = vmatmul.mubr.f32.gmra.mxu1 %v428_v19 }
  0x8d   : > { %610 = vmatprep.mubr.f32.mxu0 %v399_v20  ;;  %706 = vmatprep.mubr.f32.mxu1 %v431_v21 }
  0x90   : > { %611 = vmatmul.mubr.f32.gmra.mxu0 %v398_v22  ;;  %707 = vmatmul.mubr.f32.gmra.mxu1 %v430_v23 }
  0x91   : > { %616 = vmatprep.mubr.f32.mxu0 %v401_v24  ;;  %712 = vmatprep.mubr.f32.mxu1 %v433_v25 }
  0x94   : > { %617 = vmatmul.mubr.f32.gmra.mxu0 %v400_v26  ;;  %713 = vmatmul.mubr.f32.gmra.mxu1 %v432_v27 }
  0x95   : > { %622 = vmatprep.mubr.f32.mxu0 %v403_v28  ;;  %718 = vmatprep.mubr.f32.mxu1 %v435_v29 }
  0x98   : > { %623 = vmatmul.mubr.f32.gmra.mxu0 %v402_v30  ;;  %719 = vmatmul.mubr.f32.gmra.mxu1 %v434_v31 }
  0x99   : > { %628 = vmatprep.mubr.f32.mxu0 %v405_v32  ;;  %724 = vmatprep.mubr.f32.mxu1 %v437_v33 }
  0x9c   : > { %629 = vmatmul.mubr.f32.gmra.mxu0 %v404_v34  ;;  %725 = vmatmul.mubr.f32.gmra.mxu1 %v436_v35 }
  0x9d   : > { %634 = vmatprep.mubr.f32.mxu0 %v407_v36  ;;  %730 = vmatprep.mubr.f32.mxu1 %v439_v37 }
  0xa0   : > { %635 = vmatmul.mubr.f32.gmra.mxu0 %v406_v38  ;;  %731 = vmatmul.mubr.f32.gmra.mxu1 %v438_v39 }
  0xa1   : > { %640 = vmatprep.mubr.f32.mxu0 %v409_v40  ;;  %736 = vmatprep.mubr.f32.mxu1 %v441_v41 }
  0xa4   : > { %641 = vmatmul.mubr.f32.gmra.mxu0 %v408_v42  ;;  %737 = vmatmul.mubr.f32.gmra.mxu1 %v440_v43 }
  0xa5   : > { %646 = vmatprep.mubr.f32.mxu0 %v411_v44  ;;  %742 = vmatprep.mubr.f32.mxu1 %v443_v45 }
  0xa8   : > { %647 = vmatmul.mubr.f32.gmra.mxu0 %v410_v46  ;;  %743 = vmatmul.mubr.f32.gmra.mxu1 %v442_v47 }
  0xa9   : > { %652 = vmatprep.mubr.f32.mxu0 %v413_v48  ;;  %748 = vmatprep.mubr.f32.mxu1 %v445_v49 }
  0xac   : > { %653 = vmatmul.mubr.f32.gmra.mxu0 %v412_v50  ;;  %749 = vmatmul.mubr.f32.gmra.mxu1 %v444_v51 }
  0xad   : > { %658 = vmatprep.mubr.f32.mxu0 %v415_v52  ;;  %754 = vmatprep.mubr.f32.mxu1 %v447_v53 }
  0xb0   : > { %659 = vmatmul.mubr.f32.gmra.mxu0 %v414_v54  ;;  %755 = vmatmul.mubr.f32.gmra.mxu1 %v446_v55 }
  0xb1   : > { %664 = vmatprep.mubr.f32.mxu0 %v417_v56  ;;  %760 = vmatprep.mubr.f32.mxu1 %v449_v57 }
  0xb4   : > { %665 = vmatmul.mubr.f32.gmra.mxu0 %v416_v58  ;;  %761 = vmatmul.mubr.f32.gmra.mxu1 %v448_v59 }
  0xb5   : > { %670 = vmatprep.mubr.f32.mxu0 %v419_v60  ;;  %766 = vmatprep.mubr.f32.mxu1 %v451_v61 }
  0xb8   : > { %671 = vmatmul.mubr.f32.gmra.mxu0 %v418_v62  ;;  %767 = vmatmul.mubr.f32.gmra.mxu1 %v450_v63 }
 0x13c   : > { %v582_v0 = vpop.f32.mrf.mxu0  ;;  %v678_v1 = vpop.f32.mrf.mxu1 }
 0x13d   : > { %968 = vst [vmem:[%s1760_s21] sm:$0xff] %v582_v0  ;;  %1000 = vst [vmem:[%s1760_s21 + $0x100] sm:$0xff] %v678_v1 }
 0x13e   : > { %v584_v2 = vpop.f32.mrf.mxu0  ;;  %v680_v3 = vpop.f32.mrf.mxu1 }
 0x13f   : > { %969 = vst [vmem:[%s1760_s21 + $0x8] sm:$0xff] %v584_v2  ;;  %1001 = vst [vmem:[%s1760_s21 + $0x108] sm:$0xff] %v680_v3 }
 0x140   : > { %v588_v4 = vpop.f32.mrf.mxu0  ;;  %v684_v5 = vpop.f32.mrf.mxu1 }
 0x141   : > { %970 = vst [vmem:[%s1760_s21 + $0x10] sm:$0xff] %v588_v4  ;;  %1002 = vst [vmem:[%s1760_s21 + $0x110] sm:$0xff] %v684_v5 }
 0x142   : > { %v590_v6 = vpop.f32.mrf.mxu0  ;;  %v686_v7 = vpop.f32.mrf.mxu1 }
 0x143   : > { %971 = vst [vmem:[%s1760_s21 + $0x18] sm:$0xff] %v590_v6  ;;  %1003 = vst [vmem:[%s1760_s21 + $0x118] sm:$0xff] %v686_v7 }
 0x144   : > { %v594_v8 = vpop.f32.mrf.mxu0  ;;  %v690_v9 = vpop.f32.mrf.mxu1 }
 0x145   : > { %972 = vst [vmem:[%s1760_s21 + $0x20] sm:$0xff] %v594_v8  ;;  %1004 = vst [vmem:[%s1760_s21 + $0x120] sm:$0xff] %v690_v9 }
 0x146   : > { %v596_v10 = vpop.f32.mrf.mxu0  ;;  %v692_v11 = vpop.f32.mrf.mxu1 }
 0x147   : > { %973 = vst [vmem:[%s1760_s21 + $0x28] sm:$0xff] %v596_v10  ;;  %1005 = vst [vmem:[%s1760_s21 + $0x128] sm:$0xff] %v692_v11 }
 0x148   : > { %v600_v12 = vpop.f32.mrf.mxu0  ;;  %v696_v13 = vpop.f32.mrf.mxu1 }
 0x149   : > { %974 = vst [vmem:[%s1760_s21 + $0x30] sm:$0xff] %v600_v12  ;;  %1006 = vst [vmem:[%s1760_s21 + $0x130] sm:$0xff] %v696_v13 }
 0x14a   : > { %v602_v14 = vpop.f32.mrf.mxu0  ;;  %v698_v15 = vpop.f32.mrf.mxu1 }
 0x14b   : > { %975 = vst [vmem:[%s1760_s21 + $0x38] sm:$0xff] %v602_v14  ;;  %1007 = vst [vmem:[%s1760_s21 + $0x138] sm:$0xff] %v698_v15 }
 0x14c   : > { %v606_v16 = vpop.f32.mrf.mxu0  ;;  %v702_v17 = vpop.f32.mrf.mxu1 }
 0x14d   : > { %976 = vst [vmem:[%s1760_s21 + $0x40] sm:$0xff] %v606_v16  ;;  %1008 = vst [vmem:[%s1760_s21 + $0x140] sm:$0xff] %v702_v17 }
 0x14e   : > { %v608_v18 = vpop.f32.mrf.mxu0  ;;  %v704_v19 = vpop.f32.mrf.mxu1 }
 0x14f   : > { %977 = vst [vmem:[%s1760_s21 + $0x48] sm:$0xff] %v608_v18  ;;  %1009 = vst [vmem:[%s1760_s21 + $0x148] sm:$0xff] %v704_v19 }
 0x150   : > { %v612_v20 = vpop.f32.mrf.mxu0  ;;  %v708_v21 = vpop.f32.mrf.mxu1 }
 0x151   : > { %978 = vst [vmem:[%s1760_s21 + $0x50] sm:$0xff] %v612_v20  ;;  %1010 = vst [vmem:[%s1760_s21 + $0x150] sm:$0xff] %v708_v21 }
 0x152   : > { %v614_v22 = vpop.f32.mrf.mxu0  ;;  %v710_v23 = vpop.f32.mrf.mxu1 }
 0x153   : > { %979 = vst [vmem:[%s1760_s21 + $0x58] sm:$0xff] %v614_v22  ;;  %1011 = vst [vmem:[%s1760_s21 + $0x158] sm:$0xff] %v710_v23 }
 0x154   : > { %v618_v24 = vpop.f32.mrf.mxu0  ;;  %v714_v25 = vpop.f32.mrf.mxu1 }
 0x155   : > { %980 = vst [vmem:[%s1760_s21 + $0x60] sm:$0xff] %v618_v24  ;;  %1012 = vst [vmem:[%s1760_s21 + $0x160] sm:$0xff] %v714_v25 }
 0x156   : > { %v620_v26 = vpop.f32.mrf.mxu0  ;;  %v716_v27 = vpop.f32.mrf.mxu1 }
 0x157   : > { %981 = vst [vmem:[%s1760_s21 + $0x68] sm:$0xff] %v620_v26  ;;  %1013 = vst [vmem:[%s1760_s21 + $0x168] sm:$0xff] %v716_v27 }
 0x158   : > { %v624_v28 = vpop.f32.mrf.mxu0  ;;  %v720_v29 = vpop.f32.mrf.mxu1 }
 0x159   : > { %982 = vst [vmem:[%s1760_s21 + $0x70] sm:$0xff] %v624_v28  ;;  %1014 = vst [vmem:[%s1760_s21 + $0x170] sm:$0xff] %v720_v29 }
 0x15a   : > { %v626_v30 = vpop.f32.mrf.mxu0  ;;  %v722_v31 = vpop.f32.mrf.mxu1 }
 0x15b   : > { %983 = vst [vmem:[%s1760_s21 + $0x78] sm:$0xff] %v626_v30  ;;  %1015 = vst [vmem:[%s1760_s21 + $0x178] sm:$0xff] %v722_v31 }
 0x15c   : > { %v630_v32 = vpop.f32.mrf.mxu0  ;;  %v726_v33 = vpop.f32.mrf.mxu1 }
 0x15d   : > { %984 = vst [vmem:[%s1760_s21 + $0x80] sm:$0xff] %v630_v32  ;;  %1016 = vst [vmem:[%s1760_s21 + $0x180] sm:$0xff] %v726_v33 }
 0x15e   : > { %v632_v34 = vpop.f32.mrf.mxu0  ;;  %v728_v35 = vpop.f32.mrf.mxu1 }
 0x15f   : > { %985 = vst [vmem:[%s1760_s21 + $0x88] sm:$0xff] %v632_v34  ;;  %1017 = vst [vmem:[%s1760_s21 + $0x188] sm:$0xff] %v728_v35 }
 0x160   : > { %v636_v36 = vpop.f32.mrf.mxu0  ;;  %v732_v37 = vpop.f32.mrf.mxu1 }
 0x161   : > { %986 = vst [vmem:[%s1760_s21 + $0x90] sm:$0xff] %v636_v36  ;;  %1018 = vst [vmem:[%s1760_s21 + $0x190] sm:$0xff] %v732_v37 }
 0x162   : > { %v638_v38 = vpop.f32.mrf.mxu0  ;;  %v734_v39 = vpop.f32.mrf.mxu1 }
 0x163   : > { %987 = vst [vmem:[%s1760_s21 + $0x98] sm:$0xff] %v638_v38  ;;  %1019 = vst [vmem:[%s1760_s21 + $0x198] sm:$0xff] %v734_v39 }
 0x164   : > { %v642_v40 = vpop.f32.mrf.mxu0  ;;  %v738_v41 = vpop.f32.mrf.mxu1 }
 0x165   : > { %988 = vst [vmem:[%s1760_s21 + $0xa0] sm:$0xff] %v642_v40  ;;  %1020 = vst [vmem:[%s1760_s21 + $0x1a0] sm:$0xff] %v738_v41 }
 0x166   : > { %v644_v42 = vpop.f32.mrf.mxu0  ;;  %v740_v43 = vpop.f32.mrf.mxu1 }
 0x167   : > { %989 = vst [vmem:[%s1760_s21 + $0xa8] sm:$0xff] %v644_v42  ;;  %1021 = vst [vmem:[%s1760_s21 + $0x1a8] sm:$0xff] %v740_v43 }
 0x168   : > { %v648_v44 = vpop.f32.mrf.mxu0  ;;  %v744_v45 = vpop.f32.mrf.mxu1 }
 0x169   : > { %990 = vst [vmem:[%s1760_s21 + $0xb0] sm:$0xff] %v648_v44  ;;  %1022 = vst [vmem:[%s1760_s21 + $0x1b0] sm:$0xff] %v744_v45 }
 0x16a   : > { %v650_v46 = vpop.f32.mrf.mxu0  ;;  %v746_v47 = vpop.f32.mrf.mxu1 }
 0x16b   : > { %991 = vst [vmem:[%s1760_s21 + $0xb8] sm:$0xff] %v650_v46  ;;  %1023 = vst [vmem:[%s1760_s21 + $0x1b8] sm:$0xff] %v746_v47 }
 0x16c   : > { %v654_v48 = vpop.f32.mrf.mxu0  ;;  %v750_v49 = vpop.f32.mrf.mxu1 }
 0x16d   : > { %992 = vst [vmem:[%s1760_s21 + $0xc0] sm:$0xff] %v654_v48  ;;  %1024 = vst [vmem:[%s1760_s21 + $0x1c0] sm:$0xff] %v750_v49 }
 0x16e   : > { %v656_v50 = vpop.f32.mrf.mxu0  ;;  %v752_v51 = vpop.f32.mrf.mxu1 }
 0x16f   : > { %993 = vst [vmem:[%s1760_s21 + $0xc8] sm:$0xff] %v656_v50  ;;  %1025 = vst [vmem:[%s1760_s21 + $0x1c8] sm:$0xff] %v752_v51 }
 0x170   : > { %v660_v52 = vpop.f32.mrf.mxu0  ;;  %v756_v53 = vpop.f32.mrf.mxu1 }
 0x171   : > { %994 = vst [vmem:[%s1760_s21 + $0xd0] sm:$0xff] %v660_v52  ;;  %1026 = vst [vmem:[%s1760_s21 + $0x1d0] sm:$0xff] %v756_v53 }
 0x172   : > { %v662_v54 = vpop.f32.mrf.mxu0  ;;  %v758_v55 = vpop.f32.mrf.mxu1 }
 0x173   : > { %995 = vst [vmem:[%s1760_s21 + $0xd8] sm:$0xff] %v662_v54  ;;  %1027 = vst [vmem:[%s1760_s21 + $0x1d8] sm:$0xff] %v758_v55 }
 0x174   : > { %v666_v56 = vpop.f32.mrf.mxu0  ;;  %v762_v57 = vpop.f32.mrf.mxu1 }
 0x175   : > { %996 = vst [vmem:[%s1760_s21 + $0xe0] sm:$0xff] %v666_v56  ;;  %1028 = vst [vmem:[%s1760_s21 + $0x1e0] sm:$0xff] %v762_v57 }
 0x176   : > { %v668_v58 = vpop.f32.mrf.mxu0  ;;  %v764_v59 = vpop.f32.mrf.mxu1 }
 0x177   : > { %997 = vst [vmem:[%s1760_s21 + $0xe8] sm:$0xff] %v668_v58  ;;  %1029 = vst [vmem:[%s1760_s21 + $0x1e8] sm:$0xff] %v764_v59 }
 0x178   : > { %v672_v60 = vpop.f32.mrf.mxu0  ;;  %v768_v61 = vpop.f32.mrf.mxu1 }
 0x179   : > { %998 = vst [vmem:[%s1760_s21 + $0xf0] sm:$0xff] %v672_v60  ;;  %1030 = vst [vmem:[%s1760_s21 + $0x1f0] sm:$0xff] %v768_v61 }
 0x17a   : > { %v674_v62 = vpop.f32.mrf.mxu0  ;;  %v770_v63 = vpop.f32.mrf.mxu1 }
 0x17b   : > { %999 = vst [vmem:[%s1760_s21 + $0xf8] sm:$0xff] %v674_v62  ;;  %1031 = vst [vmem:[%s1760_s21 + $0x1f8] sm:$0xff] %v770_v63 }
 0x17c   : > { %1402 = shalt.err (!%p1399_p5)
}
 0x17d   : > { %s1403_s4 = scalar_lea.hbm %s1827_s7, 8192  ;;  %s1407_s6 = scalar_lea.hbm %s1882_s2, 24576 }
 0x17e   : > { %p1404_p4 = scmp.ne.s32.totalorder %s1827_s7, %s1403_s4  ;;  %p1408_p7 = scmp.lt.s32.totalorder %s1827_s7, %s1882_s2 }
 0x17f   : > { %p1409_p10 = scmp.lt.s32.totalorder %s1407_s6, %s1403_s4 }
 0x180   : > { %p1405_p6 = pnand %p1404_p4, %p1548_p9 }
 0x181   : > { %p1410_p8 = por %p1409_p10, %p1408_p7 }
 0x182   : > { %p1406_p0 = pneg %p1405_p6 }
 0x184   : > { %p1411_p13 = pnand %p1410_p8, %p1406_p0 }
 0x186   : > { %1414 = shalt.err (!%p1411_p13)
}
 0x187   : > { %s1480_s18 = smov 256   ;;  %s1481_s21 = smov 16  }
 0x188   : > { %1266 = dma.vmem_to_hbm [thread:$0]  (%p1548_p9), %s1829_s28, 8192, %s1827_s7, %s1033_s12, %s1480_s18, %s1480_s18, %s1481_s21  }
 0x189 PF: > { %p1280_p1 = scmp.ge.s32.totalorder %s1473_s14, 2  ;;  %s1066_s19 = sand.u32 1, %s1453_s9  }
 0x18a   : > { %s1067_s29 = scalar_lea.sflag [#allocation5], %s1066_s19 }
 0x18b   : > { %p1276_p12 = pnand %p1280_p1, %p1555_p11 }
 0x18d   : > { %p1277_p2 = pneg %p1276_p12 }
 0x18f   : > { %1448 = dma.done.wait (%p1277_p2), %s1067_s29, 8192  }
 0x190   : > { %1450 = vsyncadd (%p1277_p2), %s1067_s29, 4294959104  ;;  %s21_s14 = sadd.s32 1, %s1473_s14   ;;  %s1889_s9 = smov %s1457_s10 }
 0x191   : > { %p18_p3 = scmp.ge.s32.totalorder %s21_s14, 5   ;;  %s1890_s10 = smov %s1461_s11 }
 0x192   : > { %s1891_s11 = smov %s1553_s23  ;;  %s1892_s12 = smov %s1469_s13 }
 0x193   : > { %s1893_s13 = smov %s1895_s17  ;;  %20 = sbr.rel (!%p18_p3) target bundleno = 8 (0x8), region = 94 }
 0x198   :  { %1072 = vsyncpa [#allocation4], 1 }
 0x199   :  { %1074 = vsyncpa [#allocation4 + $0x1], 1 }
 0x19a   :  { %1075 = vsyncpa [#allocation7], 1 }
 0x19b   :  { %1077 = vsyncpa [#allocation7 + $0x1], 1 }
 0x19c   :  { %1078 = vsyncpa [#allocation5], 1 }
 0x19d   :  { %1080 = vsyncpa [#allocation5 + $0x1], 1 }

</bundles_post_ra>
